<compile_context>
chip_gen: v5e
topology: v5e:2x2
jax: 0.10.0
libtpu: 0.0.40
codegen_flags: <defaults>
</compile_context>

<pallas_src>
import jax
import jax.numpy as jnp
from jax.experimental import pallas as pl
from jax.experimental.pallas import tpu as pltpu

LANES = 128
SUBLANES = 8
MAX_BLOCK_ROWS = 2048  # (2048, 128) f32 = 1 MiB per input per block


def _make_sqdiff_kernel(rows, block_rows, steps_per_core, needs_mask):
    """Kernel accumulating sum-of-squared-diffs into a resident (8,128) block."""

    def kernel(x_ref, t_ref, out_ref):
        s = pl.program_id(1)

        @pl.when(s == 0)
        def _():
            out_ref[...] = jnp.zeros_like(out_ref)

        d = x_ref[...].astype(jnp.float32) - t_ref[...].astype(jnp.float32)
        sq = d * d

        if needs_mask:
            # Zero out rows past the true row count (block overhang reads
            # unspecified values).  Row-level masking keeps indices small.
            blk = pl.program_id(0) * steps_per_core + s
            row_ids = jax.lax.broadcasted_iota(jnp.int32, (block_rows, LANES), 0)
            global_row = blk * block_rows + row_ids
            sq = jnp.where(global_row < rows, sq, 0.0)

        # Fold the (block_rows, 128) block into one (8, 128) vreg accumulator:
        # pure element-wise VPU adds across vregs; no cross-lane work here.
        out_ref[...] += jnp.sum(
            sq.reshape(block_rows // SUBLANES, SUBLANES, LANES), axis=0
        )

    return kernel


def _partial_sq_diff_sums(x2d, t2d):
    """Returns per-core (8,128) partial sums of (x - t)**2 over a (rows,128) slab."""
    rows, cols = x2d.shape
    assert cols == LANES and t2d.shape == x2d.shape

    if rows <= MAX_BLOCK_ROWS:
        # Single block covering everything; round up to a sublane multiple so
        # the in-kernel fold stays regular (overhang rows are masked).
        block_rows = ((rows + SUBLANES - 1) // SUBLANES) * SUBLANES
        num_blocks = 1
    else:
        block_rows = MAX_BLOCK_ROWS
        num_blocks = pl.cdiv(rows, block_rows)

    # v7x megacore: split row-blocks across 2 TensorCores when it divides
    # evenly (avoids fully out-of-bounds blocks).  No effect on 1-TC chips.
    ncores = 2 if (num_blocks >= 2 and num_blocks % 2 == 0) else 1
    steps = num_blocks // ncores
    needs_mask = (block_rows * num_blocks) != rows

    kernel = _make_sqdiff_kernel(rows, block_rows, steps, needs_mask)

    partials = pl.pallas_call(
        kernel,
        out_shape=jax.ShapeDtypeStruct((ncores * SUBLANES, LANES), jnp.float32),
        grid_spec=pltpu.PrefetchScalarGridSpec(
            num_scalar_prefetch=0,
            grid=(ncores, steps),
            in_specs=[
                pl.BlockSpec((block_rows, LANES), lambda p, s: (p * steps + s, 0)),
                pl.BlockSpec((block_rows, LANES), lambda p, s: (p * steps + s, 0)),
            ],
            # Same output block across the reduction axis -> resident VMEM
            # accumulator; one 4 KiB writeback per core at the end.
            out_specs=pl.BlockSpec((SUBLANES, LANES), lambda p, s: (p, 0)),
        ),
        compiler_params=pltpu.CompilerParams(
            dimension_semantics=("parallel", "arbitrary"),
        ),
    )(x2d, t2d)
    return partials


def _to_lane2d(x):
    """View x as a (rows, 128) lane-dense slab.

    Free (no data copy) whenever x.size % 128 == 0; only a truly ragged tail
    (size not a multiple of 128) forces a zero-pad copy.  Zero padding is
    applied identically to input and target, so it contributes 0 to the sum.
    """
    n = x.size
    flat = x.reshape(-1)
    rem = n % LANES
    if rem:
        flat = jnp.pad(flat, (0, LANES - rem))
    return flat.reshape(-1, LANES), n


class ContentLoss:
    """JAX/Pallas equivalent of the PyTorch ContentLoss module."""

    def __init__(self, target):
        self.target = jax.lax.stop_gradient(target)
        self._t2d, self._n = _to_lane2d(self.target)
        self.loss = None

    def __call__(self, x):
        x2d, n = _to_lane2d(x)
        assert n == self._n, "input/target element-count mismatch"
        partials = _partial_sq_diff_sums(x2d, self._t2d)
        # One-off final reduction + divide; negligible vs. the HBM-bound scan.
        # TODO(synk): stateful `self.loss` side effect mirrors the PyTorch
        # module but is not jit/vmap-friendly; return the loss if tracing.
        self.loss = (jnp.sum(partials) / jnp.float32(n)).astype(jnp.float32)
        return x  # pass-through, exactly like the PyTorch module


if __name__ == "__main__":
    key = jax.random.PRNGKey(0)
    k1, k2 = jax.random.split(key)
    # NCHW, small shapes consistent with a conv feature map.
    x = jax.random.normal(k1, (2, 4, 16, 16), dtype=jnp.float32)
    target = jax.random.normal(k2, (2, 4, 16, 16), dtype=jnp.float32)

    module = ContentLoss(target)
    out = module(x)
    jax.block_until_ready(out)
    jax.block_until_ready(module.loss)

    # Reference check against plain JAX MSE.
    ref = jnp.mean((x - target) ** 2)
    assert jnp.allclose(module.loss, ref, rtol=1e-5, atol=1e-6), (module.loss, ref)
    assert jnp.array_equal(out, x)

    # Also exercise a larger, multi-block, ragged-tail case for robustness.
    k3, k4 = jax.random.split(k1)
    xb = jax.random.normal(k3, (3, 8, 70, 129), dtype=jnp.float32)  # ragged size
    tb = jax.random.normal(k4, (3, 8, 70, 129), dtype=jnp.float32)
    mb = ContentLoss(tb)
    _ = mb(xb)
    jax.block_until_ready(mb.loss)
    refb = jnp.mean((xb - tb) ** 2)
    assert jnp.allclose(mb.loss, refb, rtol=1e-5, atol=1e-6), (mb.loss, refb)

    print("KERNEL_OK")
</pallas_src>

<mosaic_0001>
module attributes {stable_mosaic.version = 11 : i64} {
  func.func @kernel(%arg0: i32, %arg1: i32, %arg2: memref<16x128xf32, #tpu.memory_space<vmem>>, %arg3: memref<16x128xf32, #tpu.memory_space<vmem>>, %arg4: memref<8x128xf32, #tpu.memory_space<vmem>>) attributes {dimension_semantics = [#tpu.dimension_semantics<parallel>, #tpu.dimension_semantics<arbitrary>], iteration_bounds = array<i64: 1, 1>, scalar_prefetch = 0 : i64, scratch_operands = 0 : i64, tpu.core_type = #tpu.core_type<tc>, window_params = [{transform_indices = @transform_0, window_bounds = array<i64: 16, 128>}, {transform_indices = @transform_1, window_bounds = array<i64: 16, 128>}, {transform_indices = @transform_2, window_bounds = array<i64: 8, 128>}]} {
    %c0_i32 = arith.constant 0 : i32
    %0 = arith.cmpi eq, %arg1, %c0_i32 : i32
    %1 = arith.extui %0 : i1 to i32
    %c0_i32_0 = arith.constant 0 : i32
    %2 = arith.cmpi ne, %1, %c0_i32_0 : i32
    scf.if %2 {
      %cst_8 = arith.constant 0.000000e+00 : f32
      %12 = vector.broadcast %cst_8 : f32 to vector<8x128xf32>
      %c0_9 = arith.constant 0 : index
      %c0_10 = arith.constant 0 : index
      %13 = vector.load %arg4[%c0_9, %c0_10] : memref<8x128xf32, #tpu.memory_space<vmem>>, vector<8x128xf32>
      tpu.vector_store %arg4[%c0_9, %c0_10], %12 {strides = array<i32>} : memref<8x128xf32, #tpu.memory_space<vmem>>, vector<8x128xf32>,
    } else {
    }
    %c0 = arith.constant 0 : index
    %c0_1 = arith.constant 0 : index
    %3 = vector.load %arg2[%c0, %c0_1] : memref<16x128xf32, #tpu.memory_space<vmem>>, vector<16x128xf32>
    %c0_2 = arith.constant 0 : index
    %c0_3 = arith.constant 0 : index
    %4 = vector.load %arg3[%c0_2, %c0_3] : memref<16x128xf32, #tpu.memory_space<vmem>>, vector<16x128xf32>
    %5 = arith.subf %3, %4 : vector<16x128xf32>
    %6 = arith.mulf %5, %5 : vector<16x128xf32>
    %c0_4 = arith.constant 0 : index
    %c0_5 = arith.constant 0 : index
    %7 = vector.load %arg4[%c0_4, %c0_5] : memref<8x128xf32, #tpu.memory_space<vmem>>, vector<8x128xf32>
    %8 = vector.shape_cast %6 : vector<16x128xf32> to vector<2x8x128xf32>
    %cst = arith.constant dense<0.000000e+00> : vector<8x128xf32>
    %9 = vector.multi_reduction <add>, %8, %cst [0] : vector<2x8x128xf32> to vector<8x128xf32>
    %10 = arith.addf %7, %9 : vector<8x128xf32>
    %c0_6 = arith.constant 0 : index
    %c0_7 = arith.constant 0 : index
    %11 = vector.load %arg4[%c0_6, %c0_7] : memref<8x128xf32, #tpu.memory_space<vmem>>, vector<8x128xf32>
    tpu.vector_store %arg4[%c0_6, %c0_7], %10 {strides = array<i32>} : memref<8x128xf32, #tpu.memory_space<vmem>>, vector<8x128xf32>,
    return
  }
  func.func @transform_0(%arg0: i32, %arg1: i32) -> (i32, i32) {
    %c1_i32 = arith.constant 1 : i32
    %0 = arith.muli %arg0, %c1_i32 : i32
    %1 = arith.addi %0, %arg1 : i32
    %c0_i32 = arith.constant 0 : i32
    %c0_i32_0 = arith.constant 0 : i32
    return %1, %c0_i32 : i32, i32
  }
  func.func @transform_1(%arg0: i32, %arg1: i32) -> (i32, i32) {
    %c1_i32 = arith.constant 1 : i32
    %0 = arith.muli %arg0, %c1_i32 : i32
    %1 = arith.addi %0, %arg1 : i32
    %c0_i32 = arith.constant 0 : i32
    %c0_i32_0 = arith.constant 0 : i32
    return %1, %c0_i32 : i32, i32
  }
  func.func @transform_2(%arg0: i32, %arg1: i32) -> (i32, i32) {
    %c0_i32 = arith.constant 0 : i32
    %c0_i32_0 = arith.constant 0 : i32
    return %arg0, %c0_i32 : i32, i32
  }
}

</mosaic_0001>

<bundles_post_ra>
// kernel: tpu_custom_call.1
= control target key start
LH: loop header
LB: loop body
LE: loop exit
PB: predicated region body
PF: predicated region fallthrough
CT: control target
= control target key end

     0   :  { %7 = vsyncpa [#allocation3], 0  ;;  %s204_s0 = inlined_call_operand.hbm [shape: f32[16,128], index: 0, kind: input, shape index: {}]   ;;  %s205_s1 = inlined_call_operand.hbm [shape: f32[16,128], index: 1, kind: input, shape index: {}]   ;;  %s206_s2 = inlined_call_operand.hbm [shape: f32[8,128], index: 2, kind: output, shape index: {}]  }
   0x1   :  { %8 = vsyncpa [#allocation6], 0 }
   0x2   :  { %9 = vsyncpa [#allocation4], 0  ;;  %s18_s11 = sshll.u32 %s204_s0, 4  ;;  %s175_s12 = smov [#allocation2]   ;;  %s19_s11 = int_to_ptr.hbm [resolvable:$true] %s18_s11 }
   0x3   :  { %s20_s13 = sshll.u32 %s175_s12, 4  ;;  %s35_s16 = sshll.u32 %s205_s1, 4  ;;  %s21_s13 = int_to_ptr.vmem [resolvable:$true] %s20_s13  ;;  %s36_s16 = int_to_ptr.hbm [resolvable:$true] %s35_s16 }
   0x4   :  { %s176_s17 = smov 128   ;;  %s177_s18 = smov 8  }
   0x5   :  { %26 = dma.hbm_to_vmem [thread:$0]  %s19_s11, 256, %s21_s13, [#allocation3], %s176_s17, %s176_s17, %s177_s18  }
   0x6   :  { %s178_s19 = smov [#allocation5]  }
   0x7   :  { %s37_s20 = sshll.u32 %s178_s19, 4  ;;  %s38_s20 = int_to_ptr.vmem [resolvable:$true] %s37_s20 }
   0x8   :  { %43 = dma.hbm_to_vmem [thread:$0]  %s36_s16, 256, %s38_s20, [#allocation6], %s176_s17, %s176_s17, %s177_s18  }
   0x9   :  { %169 = dma.done.wait [#allocation3], 256  }
   0xa   :  { %170 = vsyncadd [#allocation3], 4294967040 }
   0xb   :  { %171 = dma.done.wait [#allocation6], 256  }
   0xc   :  { %172 = vsyncadd [#allocation6], 4294967040  ;;  %v61_v0 = vld [vmem:[#allocation2] sm:$0xff]  ;;  %v62_v1 = vld [vmem:[#allocation2 + $0x8] sm:$0xff]  ;;  %s179_s0 = smov [#allocation7]   ;;  %s80_s23 = sshll.u32 %s206_s2, 4  ;;  %s81_s23 = int_to_ptr.hbm [resolvable:$true] %s80_s23 }
   0xd   :  { %v63_v2 = vld [vmem:[#allocation5] sm:$0xff]  ;;  %v64_v3 = vld [vmem:[#allocation5 + $0x8] sm:$0xff]  ;;  %s78_s1 = sshll.u32 %s179_s0, 4  ;;  %s79_s1 = int_to_ptr.vmem [resolvable:$true] %s78_s1 }
   0xe   :  { %v65_v4 = vsub.f32 %v61_v0, %v63_v2  ;;  %v66_v5 = vsub.f32 %v62_v1, %v64_v3 }
  0x10   :  { %v67_v6 = vmul.f32 %v65_v4, %v65_v4  ;;  %v68_v7 = vmul.f32 %v66_v5, %v66_v5 }
  0x12   :  { %v70_v8 = vadd.f32 %v68_v7, %v67_v6 }
  0x14   :  { %72 = vst [vmem:[#allocation7] sm:$0xff] %v70_v8 }
  0x15   :  { %83 = dma.vmem_to_hbm [thread:$0]  %s79_s1, 128, %s81_s23, [#allocation4]  }
  0x16   :  { %173 = dma.done.wait [#allocation4], 128  }
  0x17   :  { %174 = vsyncadd [#allocation4], 4294967168 }
  0x18   :  { %88 = vsyncpa [#allocation3], 1 }
  0x19   :  { %89 = vsyncpa [#allocation6], 1 }
  0x1a   :  { %90 = vsyncpa [#allocation4], 1 }

</bundles_post_ra>
